<compile_context>
chip_gen: v6e
topology: v6e:2x2x1
jax: 0.10.0
libtpu: 0.0.40
codegen_flags: <defaults>
</compile_context>

<pallas_src>
import functools

import jax
import jax.numpy as jnp
from jax.experimental import pallas as pl
from jax.experimental.pallas import tpu as pltpu


LANE = 128


def _round_up(x, m):
    return ((x + m - 1) // m) * m


def _vmem_limit_bytes():
    """Per-generation scoped-VMEM limit (default is only 16/32 MiB)."""
    cap = 128 * 1024 * 1024
    try:
        cap = int(pltpu.get_tpu_info().vmem_capacity_bytes)
    except Exception:
        pass
    return min(int(cap * 3 // 4), 96 * 1024 * 1024)


# ---------------------------------------------------------------------------
# Kernel 1: fused MLP (all Linear layers, bias + ReLU) over node-row blocks.
# One matmul per layer; pre-activation stored as the h_list entry, ReLU applied
# to the SAME result.  Weights/biases are full-resident (constant block index).
# ---------------------------------------------------------------------------
def _mlp_kernel(*refs, num_layers):
    feats_ref = refs[0]
    wb_refs = refs[1:1 + 2 * num_layers]
    out_refs = refs[1 + 2 * num_layers:]   # (num_layers-1) h_list (bf16) + h0 (f32)

    h = feats_ref[...]
    for l in range(num_layers):            # static unroll (num_layers is compile-time)
        w_ref, b_ref = wb_refs[2 * l], wb_refs[2 * l + 1]
        pre = jnp.dot(h, w_ref[...], preferred_element_type=jnp.float32) + b_ref[...]
        if l != num_layers - 1:
            out_refs[l][...] = pre.astype(out_refs[l].dtype)   # h_list entry (bf16)
            h = jnp.maximum(pre, 0.0)       # ReLU; eval-mode dropout = identity
        else:
            out_refs[-1][...] = pre.astype(out_refs[-1].dtype)  # h0 for propagation


# ---------------------------------------------------------------------------
# Kernel 2: k-step APPNP propagation with A_hat resident in VMEM.
#   h_{t+1} = A_scaled @ h_t + alpha * h0,   A_scaled = (1-alpha)*A_hat (bf16, host)
# grid=(k,): the output block has a constant index, so it is revisited every step
# and acts as the resident f32 state; HBM writeback happens once at the end.
# ---------------------------------------------------------------------------
def _propagate_kernel(a_ref, h0_ref, o_ref, ah0_ref, *, alpha):
    t = pl.program_id(0)

    @pl.when(t == 0)
    def _():
        ah0_ref[...] = alpha * h0_ref[...]   # hoisted: computed once
        o_ref[...] = h0_ref[...]             # h_0

    h = o_ref[...]                           # f32 state, resident across grid steps
    o_ref[...] = (
        jnp.dot(a_ref[...], h.astype(jnp.bfloat16),
                preferred_element_type=jnp.float32)
        + ah0_ref[...]
    )


# ---------------------------------------------------------------------------
# Forward wrapper: pad to lane-dense shapes, two pallas_calls, slice back.
# ---------------------------------------------------------------------------
def appnp_forward(params, a_hat, feats, *, k=10, alpha=0.1):
    """Mirrors APPNP.forward (eval mode, norm_type='none', activation=ReLU)."""
    num_layers = len(params)
    n, d_in = feats.shape

    n_pad = _round_up(n, LANE)               # lane-dense node dimension
    dims = [d_in] + [w.shape[1] for (w, _) in params]
    dims_pad = [_round_up(d, LANE) for d in dims]
    vmem_limit = _vmem_limit_bytes()

    # Zero padding.  NOTE: padded feature ROWS are not zero after layer 0
    # (0 @ W + b = b survives ReLU), but A_hat's padded rows/columns ARE zero,
    # so padded rows never contaminate real rows and the wrapper slices [:n].
    feats_p = jnp.pad(feats, ((0, n_pad - n), (0, dims_pad[0] - d_in)))
    a_p = jnp.pad(a_hat, ((0, n_pad - n), (0, n_pad - n)))
    # Host-side prescale + bf16 cast of the dominant N^2 operand.
    a_p = ((1.0 - alpha) * a_p).astype(jnp.bfloat16)

    wb_inputs = []
    for l, (w, b) in enumerate(params):
        w_p = jnp.pad(w, ((0, dims_pad[l] - w.shape[0]),
                          (0, dims_pad[l + 1] - w.shape[1])))
        b_p = jnp.pad(b, (0, dims_pad[l + 1] - b.shape[0])).reshape(1, dims_pad[l + 1])
        wb_inputs += [w_p, b_p]

    # ---- Call 1: MLP over node-row blocks ("parallel" -> pipelined + megacore).
    tm = 256 if (n_pad % 256 == 0) else 128   # 256-row blocks fill v6e/v7x MXU
    nb = n_pad // tm

    mlp_in_specs = [pl.BlockSpec((tm, dims_pad[0]), lambda i: (i, 0))]
    for l in range(num_layers):
        mlp_in_specs.append(
            pl.BlockSpec((dims_pad[l], dims_pad[l + 1]), lambda i: (0, 0)))
        mlp_in_specs.append(
            pl.BlockSpec((1, dims_pad[l + 1]), lambda i: (0, 0)))

    mlp_out_shapes = tuple(
        [jax.ShapeDtypeStruct((n_pad, dims_pad[l + 1]), jnp.bfloat16)
         for l in range(num_layers - 1)]
        + [jax.ShapeDtypeStruct((n_pad, dims_pad[-1]), jnp.float32)]
    )
    mlp_out_specs = tuple(
        pl.BlockSpec((tm, s.shape[1]), lambda i: (i, 0)) for s in mlp_out_shapes
    )

    mlp_flops = sum(2 * n_pad * dims_pad[l] * dims_pad[l + 1]
                    for l in range(num_layers))
    mlp_bytes = (int(feats_p.size) * 4
                 + sum(int(x.size) * 4 for x in wb_inputs)
                 + sum(s.shape[0] * s.shape[1] * (2 if s.dtype == jnp.bfloat16 else 4)
                       for s in mlp_out_shapes))

    mlp_outs = pl.pallas_call(
        functools.partial(_mlp_kernel, num_layers=num_layers),
        out_shape=mlp_out_shapes,
        grid=(nb,),
        in_specs=mlp_in_specs,
        out_specs=mlp_out_specs,
        compiler_params=pltpu.CompilerParams(
            dimension_semantics=("parallel",),
            vmem_limit_bytes=vmem_limit),
        cost_estimate=pl.CostEstimate(
            flops=int(mlp_flops), transcendentals=0,
            bytes_accessed=int(mlp_bytes)),
    )(feats_p, *wb_inputs)

    if not isinstance(mlp_outs, (tuple, list)):
        mlp_outs = (mlp_outs,)
    h0_p = mlp_outs[-1]

    # ---- Call 2: k-step propagation. A_hat (bf16), h0, alpha*h0 and the f32 state
    # all stay VMEM-resident across the k steps; A is read from HBM exactly once.
    # TODO(synk): add a row-tiled fallback when (1-alpha)*A_hat (bf16) exceeds the
    #             per-generation VMEM budget (64 MiB on v7x).
    d_out_pad = dims_pad[-1]
    if k == 0:
        h_p = h0_p
    else:
        prop_flops = 2 * k * n_pad * n_pad * d_out_pad
        prop_bytes = int(a_p.size) * 2 + 2 * n_pad * d_out_pad * 4
        h_p = pl.pallas_call(
            functools.partial(_propagate_kernel, alpha=alpha),
            out_shape=jax.ShapeDtypeStruct((n_pad, d_out_pad), jnp.float32),
            grid=(k,),
            in_specs=[pl.BlockSpec((n_pad, n_pad), lambda t: (0, 0)),
                      pl.BlockSpec((n_pad, d_out_pad), lambda t: (0, 0))],
            out_specs=pl.BlockSpec((n_pad, d_out_pad), lambda t: (0, 0)),
            scratch_shapes=[pltpu.VMEM((n_pad, d_out_pad), jnp.float32)],
            compiler_params=pltpu.CompilerParams(
                dimension_semantics=("arbitrary",),
                vmem_limit_bytes=vmem_limit),
            cost_estimate=pl.CostEstimate(
                flops=int(prop_flops), transcendentals=0,
                bytes_accessed=int(prop_bytes)),
        )(a_p, h0_p)

    h_list = [mlp_outs[l][:n, : dims[l + 1]] for l in range(num_layers - 1)]
    h = h_p[:n, : dims[-1]]
    return h_list, h


# ---------------------------------------------------------------------------
# Parameter / graph construction (plain JAX, deterministic)
# ---------------------------------------------------------------------------
def init_appnp_params(key, num_layers, input_dim, hidden_dim, output_dim):
    """Deterministic Linear-layer init (uniform, like nn.Linear.reset_parameters)."""
    dims = []
    if num_layers == 1:
        dims.append((input_dim, output_dim))
    else:
        dims.append((input_dim, hidden_dim))
        for _ in range(num_layers - 2):
            dims.append((hidden_dim, hidden_dim))
        dims.append((hidden_dim, output_dim))

    params = []
    for (d_in, d_out) in dims:
        key, kw, kb = jax.random.split(key, 3)
        bound = 1.0 / jnp.sqrt(jnp.float32(d_in))
        w = jax.random.uniform(kw, (d_in, d_out), jnp.float32, -bound, bound)
        b = jax.random.uniform(kb, (d_out,), jnp.float32, -bound, bound)
        params.append((w, b))
    return params


def build_normalized_adjacency(key, n):
    """Small random symmetric graph -> A_hat = D^{-1/2} A D^{-1/2} (dense)."""
    logits = jax.random.uniform(key, (n, n))
    adj = (logits < 0.08).astype(jnp.float32)
    adj = jnp.maximum(adj, adj.T)                       # symmetric
    idx = jnp.arange(n)                                  # ring: no isolated nodes
    ring = jnp.zeros((n, n), jnp.float32)
    ring = ring.at[idx, (idx + 1) % n].set(1.0)
    ring = jnp.maximum(ring, ring.T)
    adj = jnp.maximum(adj, ring)
    adj = adj * (1.0 - jnp.eye(n, dtype=jnp.float32))    # no self loops
    deg = jnp.sum(adj, axis=1)
    d_inv_sqrt = 1.0 / jnp.sqrt(jnp.maximum(deg, 1.0))
    return adj * d_inv_sqrt[:, None] * d_inv_sqrt[None, :]


def _reference_forward(params, a_hat, feats, *, k, alpha):
    """Plain-JAX reference (f32) for a loose sanity check."""
    num_layers = len(params)
    h = feats
    h_list = []
    for l, (w, b) in enumerate(params):
        h = h @ w + b
        if l != num_layers - 1:
            h_list.append(h)
            h = jnp.maximum(h, 0.0)
    h0 = h
    for _ in range(k):
        h = (1.0 - alpha) * (a_hat @ h) + alpha * h0
    return h_list, h


if __name__ == "__main__":
    # Small, APPNP-consistent shapes: N nodes with input_dim features.
    N, INPUT_DIM, HIDDEN_DIM, OUTPUT_DIM = 64, 32, 32, 16
    NUM_LAYERS, K, ALPHA = 2, 10, 0.1

    root = jax.random.PRNGKey(0)
    k_feat, k_graph, k_param = jax.random.split(root, 3)

    feats = jax.random.normal(k_feat, (N, INPUT_DIM), jnp.float32)
    a_hat = build_normalized_adjacency(k_graph, N)
    params = init_appnp_params(k_param, NUM_LAYERS, INPUT_DIM, HIDDEN_DIM, OUTPUT_DIM)

    h_list, h = appnp_forward(params, a_hat, feats, k=K, alpha=ALPHA)
    jax.block_until_ready(h)
    for hl in h_list:
        jax.block_until_ready(hl)

    assert h.shape == (N, OUTPUT_DIM)
    assert len(h_list) == NUM_LAYERS - 1 and h_list[0].shape == (N, HIDDEN_DIM)

    # Loose numerical sanity check (kernel uses bf16 MXU inputs for propagation
    # and bf16 h_list writeback).
    ref_list, ref_h = _reference_forward(params, a_hat, feats, k=K, alpha=ALPHA)
    scale = jnp.maximum(1.0, jnp.max(jnp.abs(ref_h)))
    assert float(jnp.max(jnp.abs(h - ref_h))) < 5e-2 * float(scale)
    for got, ref in zip(h_list, ref_list):
        s = jnp.maximum(1.0, jnp.max(jnp.abs(ref)))
        assert float(jnp.max(jnp.abs(got.astype(jnp.float32) - ref))) < 5e-2 * float(s)

    print("KERNEL_OK")
</pallas_src>

<mosaic_0001>
module attributes {stable_mosaic.version = 11 : i64} {
  func.func @_mlp_kernel(%arg0: i32, %arg1: memref<128x128xf32, #tpu.memory_space<vmem>>, %arg2: memref<128x128xf32, #tpu.memory_space<vmem>>, %arg3: memref<1x128xf32, #tpu.memory_space<vmem>>, %arg4: memref<128x128xf32, #tpu.memory_space<vmem>>, %arg5: memref<1x128xf32, #tpu.memory_space<vmem>>, %arg6: memref<128x128xbf16, #tpu.memory_space<vmem>>, %arg7: memref<128x128xf32, #tpu.memory_space<vmem>>) attributes {dimension_semantics = [#tpu.dimension_semantics<parallel>], iteration_bounds = array<i64: 1>, scalar_prefetch = 0 : i64, scratch_operands = 0 : i64, tpu.core_type = #tpu.core_type<tc>, window_params = [{transform_indices = @transform_0, window_bounds = array<i64: 128, 128>}, {pipeline_mode = #tpu.pipeline_mode<synchronous>, transform_indices = @transform_1, window_bounds = array<i64: 128, 128>}, {pipeline_mode = #tpu.pipeline_mode<synchronous>, transform_indices = @transform_2, window_bounds = array<i64: 1, 128>}, {pipeline_mode = #tpu.pipeline_mode<synchronous>, transform_indices = @transform_3, window_bounds = array<i64: 128, 128>}, {pipeline_mode = #tpu.pipeline_mode<synchronous>, transform_indices = @transform_4, window_bounds = array<i64: 1, 128>}, {transform_indices = @transform_5, window_bounds = array<i64: 128, 128>}, {transform_indices = @transform_6, window_bounds = array<i64: 128, 128>}]} {
    %c0 = arith.constant 0 : index
    %c0_0 = arith.constant 0 : index
    %0 = vector.load %arg1[%c0, %c0_0] : memref<128x128xf32, #tpu.memory_space<vmem>>, vector<128x128xf32>
    %c0_1 = arith.constant 0 : index
    %c0_2 = arith.constant 0 : index
    %1 = vector.load %arg2[%c0_1, %c0_2] : memref<128x128xf32, #tpu.memory_space<vmem>>, vector<128x128xf32>
    %cst = arith.constant dense<0.000000e+00> : vector<128x128xf32>
    %2 = tpu.matmul %0, %1, %cst {dimension_numbers = #tpu.dot_dimension_numbers<[1], [0], [0], [1], [0, 0, 1, 1], [], []>} : vector<128x128xf32>, vector<128x128xf32>, vector<128x128xf32> -> vector<128x128xf32>
    %c0_3 = arith.constant 0 : index
    %c0_4 = arith.constant 0 : index
    %3 = vector.load %arg3[%c0_3, %c0_4] : memref<1x128xf32, #tpu.memory_space<vmem>>, vector<1x128xf32>
    %4 = vector.broadcast %3 : vector<1x128xf32> to vector<128x128xf32>
    %5 = arith.addf %2, %4 : vector<128x128xf32>
    %6 = arith.truncf %5 : vector<128x128xf32> to vector<128x128xbf16>
    %c0_5 = arith.constant 0 : index
    %c0_6 = arith.constant 0 : index
    %7 = vector.load %arg6[%c0_5, %c0_6] : memref<128x128xbf16, #tpu.memory_space<vmem>>, vector<128x128xbf16>
    tpu.vector_store %arg6[%c0_5, %c0_6], %6 {strides = array<i32>} : memref<128x128xbf16, #tpu.memory_space<vmem>>, vector<128x128xbf16>,
    %cst_7 = arith.constant 0.000000e+00 : f32
    %8 = vector.broadcast %cst_7 : f32 to vector<128x128xf32>
    %9 = arith.maximumf %5, %8 : vector<128x128xf32>
    %c0_8 = arith.constant 0 : index
    %c0_9 = arith.constant 0 : index
    %10 = vector.load %arg4[%c0_8, %c0_9] : memref<128x128xf32, #tpu.memory_space<vmem>>, vector<128x128xf32>
    %cst_10 = arith.constant dense<0.000000e+00> : vector<128x128xf32>
    %11 = tpu.matmul %9, %10, %cst_10 {dimension_numbers = #tpu.dot_dimension_numbers<[1], [0], [0], [1], [0, 0, 1, 1], [], []>} : vector<128x128xf32>, vector<128x128xf32>, vector<128x128xf32> -> vector<128x128xf32>
    %c0_11 = arith.constant 0 : index
    %c0_12 = arith.constant 0 : index
    %12 = vector.load %arg5[%c0_11, %c0_12] : memref<1x128xf32, #tpu.memory_space<vmem>>, vector<1x128xf32>
    %13 = vector.broadcast %12 : vector<1x128xf32> to vector<128x128xf32>
    %14 = arith.addf %11, %13 : vector<128x128xf32>
    %c0_13 = arith.constant 0 : index
    %c0_14 = arith.constant 0 : index
    %15 = vector.load %arg7[%c0_13, %c0_14] : memref<128x128xf32, #tpu.memory_space<vmem>>, vector<128x128xf32>
    tpu.vector_store %arg7[%c0_13, %c0_14], %14 {strides = array<i32>} : memref<128x128xf32, #tpu.memory_space<vmem>>, vector<128x128xf32>,
    return
  }
  func.func @transform_0(%arg0: i32) -> (i32, i32) {
    %c0_i32 = arith.constant 0 : i32
    %c0_i32_0 = arith.constant 0 : i32
    return %arg0, %c0_i32 : i32, i32
  }
  func.func @transform_1(%arg0: i32) -> (i32, i32) {
    %c0_i32 = arith.constant 0 : i32
    %c0_i32_0 = arith.constant 0 : i32
    %c0_i32_1 = arith.constant 0 : i32
    return %c0_i32, %c0_i32_0 : i32, i32
  }
  func.func @transform_2(%arg0: i32) -> (i32, i32) {
    %c0_i32 = arith.constant 0 : i32
    %c0_i32_0 = arith.constant 0 : i32
    %c0_i32_1 = arith.constant 0 : i32
    return %c0_i32, %c0_i32_0 : i32, i32
  }
  func.func @transform_3(%arg0: i32) -> (i32, i32) {
    %c0_i32 = arith.constant 0 : i32
    %c0_i32_0 = arith.constant 0 : i32
    %c0_i32_1 = arith.constant 0 : i32
    return %c0_i32, %c0_i32_0 : i32, i32
  }
  func.func @transform_4(%arg0: i32) -> (i32, i32) {
    %c0_i32 = arith.constant 0 : i32
    %c0_i32_0 = arith.constant 0 : i32
    %c0_i32_1 = arith.constant 0 : i32
    return %c0_i32, %c0_i32_0 : i32, i32
  }
  func.func @transform_5(%arg0: i32) -> (i32, i32) {
    %c0_i32 = arith.constant 0 : i32
    %c0_i32_0 = arith.constant 0 : i32
    return %arg0, %c0_i32 : i32, i32
  }
  func.func @transform_6(%arg0: i32) -> (i32, i32) {
    %c0_i32 = arith.constant 0 : i32
    %c0_i32_0 = arith.constant 0 : i32
    return %arg0, %c0_i32 : i32, i32
  }
}

</mosaic_0001>

<bundles_post_ra>
// kernel: tpu_custom_call.1
= control target key start
LH: loop header
LB: loop body
LE: loop exit
PB: predicated region body
PF: predicated region fallthrough
CT: control target
= control target key end

     0   :  { %12 = vsyncpa [#allocation3], 0  ;;  %s1032_s0 = inlined_call_operand.hbm [shape: f32[128,128], index: 0, kind: input, shape index: {}]   ;;  %s1033_s1 = inlined_call_operand.hbm [shape: f32[128,128], index: 1, kind: input, shape index: {}]   ;;  %s1034_s2 = inlined_call_operand.vmem [shape: f32[1,128], index: 2, kind: input, shape index: {}]   ;;  %s1035_s3 = inlined_call_operand.hbm [shape: f32[128,128], index: 3, kind: input, shape index: {}]   ;;  %s1036_s4 = inlined_call_operand.vmem [shape: f32[1,128], index: 4, kind: input, shape index: {}]   ;;  %s1037_s5 = inlined_call_operand.hbm [shape: bf16[128,128], index: 5, kind: output, shape index: {0}]   ;;  %s1038_s6 = inlined_call_operand.hbm [shape: f32[128,128], index: 6, kind: output, shape index: {1}]  }
   0x1   :  { %13 = vsyncpa [#allocation6], 0 }
   0x2   :  { %14 = vsyncpa [#allocation4], 0 }
   0x3   :  { %15 = vsyncpa [#allocation10], 0  ;;  %s937_s21 = smov [#allocation5]   ;;  %s938_s23 = smov [#allocation2]  }
   0x4   :  { %s33_s22 = sshll.u32 %s937_s21, 4  ;;  %s21_s24 = sshll.u32 %s938_s23, 4  ;;  %s34_s22 = int_to_ptr.vmem [resolvable:$true] %s33_s22  ;;  %s22_s24 = int_to_ptr.vmem [resolvable:$true] %s21_s24 }
   0x5   :  { %s837_s25 = scalar_lea.vmem %s34_s22, 2048  ;;  %p842_p1 = scmp.lt.s32.totalorder %s34_s22, %s34_s22 }
   0x6   :  { %p838_p0 = scmp.ne.s32.totalorder %s34_s22, %s837_s25  ;;  %p843_p2 = scmp.lt.s32.totalorder %s837_s25, %s837_s25 }
   0x8   :  { %p844_p3 = por %p843_p2, %p842_p1 }
   0xa   :  { %p845_p4 = pnand %p844_p3, %p838_p0 }
   0xc   :  { %848 = shalt.err (!%p845_p4)
}
   0xd   :  { %s939_s26 = smov 128   ;;  %s940_s27 = smov 8  }
   0xe   :  { %39 = dma.hbm_to_vmem [thread:$0]  %s1033_s1, 2048, %s34_s22, [#allocation6], %s939_s26, %s939_s26, %s940_s27  }
   0xf   :  { %s857_s30 = scalar_lea.vmem %s22_s24, 2048  ;;  %p862_p6 = scmp.lt.s32.totalorder %s22_s24, %s22_s24 }
  0x10   :  { %p858_p5 = scmp.ne.s32.totalorder %s22_s24, %s857_s30  ;;  %p863_p7 = scmp.lt.s32.totalorder %s857_s30, %s857_s30 }
  0x12   :  { %p864_p8 = por %p863_p7, %p862_p6 }
  0x14   :  { %p865_p9 = pnand %p864_p8, %p858_p5 }
  0x16   :  { %868 = shalt.err (!%p865_p9)
}
  0x17   :  { %27 = dma.hbm_to_vmem [thread:$0]  %s1032_s0, 2048, %s22_s24, [#allocation3], %s939_s26, %s939_s26, %s940_s27  }
  0x18   :  { %s941_s9 = smov [#allocation7]  }
  0x19   :  { %s47_s10 = sshll.u32 %s941_s9, 4  ;;  %s48_s10 = int_to_ptr.vmem [resolvable:$true] %s47_s10 }
  0x1a   :  { %s877_s11 = scalar_lea.vmem %s48_s10, 2048  ;;  %p882_p11 = scmp.lt.s32.totalorder %s48_s10, %s48_s10 }
  0x1b   :  { %p878_p10 = scmp.ne.s32.totalorder %s48_s10, %s877_s11  ;;  %p883_p12 = scmp.lt.s32.totalorder %s877_s11, %s877_s11 }
  0x1d   :  { %p884_p13 = por %p883_p12, %p882_p11 }
  0x1f   :  { %p885_p0 = pnand %p884_p13, %p878_p10 }
  0x21   :  { %888 = shalt.err (!%p885_p0)
}
  0x22   :  { %53 = dma.hbm_to_vmem [thread:$0]  %s1035_s3, 2048, %s48_s10, [#allocation6], %s939_s26, %s939_s26, %s940_s27  }
  0x23   :  { %929 = dma.done.wait [#allocation3], 2048  }
  0x24   :  { %930 = vsyncadd [#allocation3], 4294965248 }
  0x25   :  { %931 = dma.done.wait [#allocation6], 4096  }
  0x26   :  { %932 = vsyncadd [#allocation6], 4294963200  ;;  %v96_v0 = vld [vmem:[#allocation5 + $0x78] sm:$0xff]  ;;  %v95_v1 = vld [vmem:[#allocation5 + $0x70] sm:$0xff] }
  0x27   :  { %708 = vmatprep.subr.mxu0 %v96_v0  ;;  %v94_v2 = vld [vmem:[#allocation5 + $0x68] sm:$0xff]  ;;  %v93_v3 = vld [vmem:[#allocation5 + $0x60] sm:$0xff]  ;;  %v92_v5 = vld [vmem:[#allocation5 + $0x58] sm:$0xff] }
  0x28   :  { %709 = vmatpush3.msra.mxu0 %v96_v0  ;;  %v65_v4 = vld [vmem:[#allocation2] sm:$0xff]  ;;  %v91_v6 = vld [vmem:[#allocation5 + $0x50] sm:$0xff]  ;;  %v90_v7 = vld [vmem:[#allocation5 + $0x48] sm:$0xff] }
  0x29   :  { %710 = vmatprep.subr.mxu0 %v95_v1  ;;  %740 = vmatprep.mubr.f32.mxu0 %v65_v4  ;;  %v360_v8 = vld [vmem:[#allocation7 + $0x78] sm:$0xff]  ;;  %v359_v9 = vld [vmem:[#allocation7 + $0x70] sm:$0xff]  ;;  %v89_v10 = vld [vmem:[#allocation5 + $0x40] sm:$0xff] }
  0x2a   :  { %711 = vmatpush3.msra.mxu0 %v95_v1  ;;  %764 = vmatprep.subr.mxu1 %v360_v8  ;;  %v358_v11 = vld [vmem:[#allocation7 + $0x68] sm:$0xff]  ;;  %v88_v12 = vld [vmem:[#allocation5 + $0x38] sm:$0xff]  ;;  %v357_v13 = vld [vmem:[#allocation7 + $0x60] sm:$0xff] }
  0x2b   :  { %712 = vmatprep.subr.mxu0 %v94_v2  ;;  %765 = vmatpush3.msra.mxu1 %v360_v8  ;;  %v87_v14 = vld [vmem:[#allocation5 + $0x30] sm:$0xff]  ;;  %v356_v15 = vld [vmem:[#allocation7 + $0x58] sm:$0xff]  ;;  %v86_v16 = vld [vmem:[#allocation5 + $0x28] sm:$0xff] }
  0x2c   :  { %713 = vmatpush3.msra.mxu0 %v94_v2  ;;  %766 = vmatprep.subr.mxu1 %v359_v9  ;;  %v355_v17 = vld [vmem:[#allocation7 + $0x50] sm:$0xff]  ;;  %v85_v18 = vld [vmem:[#allocation5 + $0x20] sm:$0xff]  ;;  %v354_v19 = vld [vmem:[#allocation7 + $0x48] sm:$0xff] }
  0x2d   :  { %714 = vmatprep.subr.mxu0 %v93_v3  ;;  %767 = vmatpush3.msra.mxu1 %v359_v9  ;;  %v84_v20 = vld [vmem:[#allocation5 + $0x18] sm:$0xff]  ;;  %v353_v21 = vld [vmem:[#allocation7 + $0x40] sm:$0xff]  ;;  %v83_v22 = vld [vmem:[#allocation5 + $0x10] sm:$0xff] }
  0x2e   :  { %715 = vmatpush3.msra.mxu0 %v93_v3  ;;  %768 = vmatprep.subr.mxu1 %v358_v11  ;;  %v352_v23 = vld [vmem:[#allocation7 + $0x38] sm:$0xff]  ;;  %v82_v24 = vld [vmem:[#allocation5 + $0x8] sm:$0xff]  ;;  %v351_v25 = vld [vmem:[#allocation7 + $0x30] sm:$0xff] }
  0x2f   :  { %716 = vmatprep.subr.mxu0 %v92_v5  ;;  %769 = vmatpush3.msra.mxu1 %v358_v11  ;;  %v81_v26 = vld [vmem:[#allocation5] sm:$0xff]  ;;  %v350_v27 = vld [vmem:[#allocation7 + $0x28] sm:$0xff]  ;;  %v67_v30 = vld [vmem:[#allocation2 + $0x10] sm:$0xff] }
  0x30   :  { %717 = vmatpush3.msra.mxu0 %v92_v5  ;;  %770 = vmatprep.subr.mxu1 %v357_v13  ;;  %v66_v28 = vld [vmem:[#allocation2 + $0x8] sm:$0xff]  ;;  %v349_v29 = vld [vmem:[#allocation7 + $0x20] sm:$0xff]  ;;  %v68_v31 = vld [vmem:[#allocation2 + $0x18] sm:$0xff] }
  0x31   :  { %718 = vmatprep.subr.mxu0 %v91_v6  ;;  %771 = vmatpush3.msra.mxu1 %v357_v13  ;;  %v69_v32 = vld [vmem:[#allocation2 + $0x20] sm:$0xff]  ;;  %v70_v33 = vld [vmem:[#allocation2 + $0x28] sm:$0xff]  ;;  %v71_v34 = vld [vmem:[#allocation2 + $0x30] sm:$0xff] }
  0x32   :  { %719 = vmatpush3.msra.mxu0 %v91_v6  ;;  %772 = vmatprep.subr.mxu1 %v356_v15  ;;  %v72_v35 = vld [vmem:[#allocation2 + $0x38] sm:$0xff]  ;;  %v73_v36 = vld [vmem:[#allocation2 + $0x40] sm:$0xff]  ;;  %v74_v37 = vld [vmem:[#allocation2 + $0x48] sm:$0xff] }
  0x33   :  { %720 = vmatprep.subr.mxu0 %v90_v7  ;;  %773 = vmatpush3.msra.mxu1 %v356_v15  ;;  %v75_v38 = vld [vmem:[#allocation2 + $0x50] sm:$0xff]  ;;  %v76_v39 = vld [vmem:[#allocation2 + $0x58] sm:$0xff]  ;;  %v77_v40 = vld [vmem:[#allocation2 + $0x60] sm:$0xff] }
  0x34   :  { %721 = vmatpush3.msra.mxu0 %v90_v7  ;;  %774 = vmatprep.subr.mxu1 %v355_v17  ;;  %v78_v41 = vld [vmem:[#allocation2 + $0x68] sm:$0xff]  ;;  %v79_v42 = vld [vmem:[#allocation2 + $0x70] sm:$0xff]  ;;  %v80_v43 = vld [vmem:[#allocation2 + $0x78] sm:$0xff] }
  0x35   :  { %722 = vmatprep.subr.mxu0 %v89_v10  ;;  %775 = vmatpush3.msra.mxu1 %v355_v17  ;;  %v348_v44 = vld [vmem:[#allocation7 + $0x18] sm:$0xff]  ;;  %v347_v45 = vld [vmem:[#allocation7 + $0x10] sm:$0xff]  ;;  %v346_v46 = vld [vmem:[#allocation7 + $0x8] sm:$0xff] }
  0x36   :  { %723 = vmatpush3.msra.mxu0 %v89_v10  ;;  %776 = vmatprep.subr.mxu1 %v354_v19  ;;  %v345_v47 = vld [vmem:[#allocation7] sm:$0xff] }
  0x37   :  { %724 = vmatprep.subr.mxu0 %v88_v12  ;;  %777 = vmatpush3.msra.mxu1 %v354_v19  ;;  %v1002_v48 = vld [vmem:[%s1034_s2] ss:$0 sm:$0xff]  ;;  %s942_s2 = smov [#allocation8]  }
  0x38   :  { %725 = vmatpush3.msra.mxu0 %v88_v12  ;;  %778 = vmatprep.subr.mxu1 %v353_v21  ;;  %s534_s13 = sshll.u32 %s942_s2, 4  ;;  %s535_s13 = int_to_ptr.vmem [resolvable:$true] %s534_s13 }
  0x39   :  { %726 = vmatprep.subr.mxu0 %v87_v14  ;;  %779 = vmatpush3.msra.mxu1 %v353_v21  ;;  %s889_s14 = scalar_lea.vmem %s535_s13, 1024  ;;  %p894_p2 = scmp.lt.s32.totalorder %s535_s13, %s535_s13 }
  0x3a   :  { %727 = vmatpush3.msra.mxu0 %v87_v14  ;;  %780 = vmatprep.subr.mxu1 %v352_v23  ;;  %p890_p1 = scmp.ne.s32.totalorder %s535_s13, %s889_s14  ;;  %p895_p3 = scmp.lt.s32.totalorder %s889_s14, %s889_s14 }
  0x3b   :  { %728 = vmatprep.subr.mxu0 %v86_v16  ;;  %781 = vmatpush3.msra.mxu1 %v352_v23 }
  0x3c   :  { %729 = vmatpush3.msra.mxu0 %v86_v16  ;;  %782 = vmatprep.subr.mxu1 %v351_v25  ;;  %p896_p4 = por %p895_p3, %p894_p2 }
  0x3d   :  { %730 = vmatprep.subr.mxu0 %v85_v18  ;;  %783 = vmatpush3.msra.mxu1 %v351_v25 }
  0x3e   :  { %731 = vmatpush3.msra.mxu0 %v85_v18  ;;  %784 = vmatprep.subr.mxu1 %v350_v27  ;;  %p897_p5 = pnand %p896_p4, %p890_p1 }
  0x3f   :  { %732 = vmatprep.subr.mxu0 %v84_v20  ;;  %785 = vmatpush3.msra.mxu1 %v350_v27 }
  0x40   :  { %733 = vmatpush3.msra.mxu0 %v84_v20  ;;  %786 = vmatprep.subr.mxu1 %v349_v29 }
  0x41   :  { %734 = vmatprep.subr.mxu0 %v83_v22  ;;  %787 = vmatpush3.msra.mxu1 %v349_v29 }
  0x42   :  { %735 = vmatpush3.msra.mxu0 %v83_v22  ;;  %788 = vmatprep.subr.mxu1 %v348_v44 }
  0x43   :  { %736 = vmatprep.subr.mxu0 %v82_v24  ;;  %789 = vmatpush3.msra.mxu1 %v348_v44 }
  0x44   :  { %737 = vmatpush3.msra.mxu0 %v82_v24  ;;  %790 = vmatprep.subr.mxu1 %v347_v45 }
  0x45   :  { %738 = vmatprep.subr.mxu0 %v81_v26  ;;  %791 = vmatpush3.msra.mxu1 %v347_v45 }
  0x46   :  { %739 = vmatpush3.msra.mxu0 %v81_v26  ;;  %792 = vmatprep.subr.mxu1 %v346_v46 }
  0x47   :  { %741 = vmatmul.mubr.f32.vlgmr.msra.gmra.mxu0 %v66_v28  ;;  %793 = vmatpush3.msra.mxu1 %v346_v46 }
  0x48   :  { %743 = vmatprep.mubr.f32.mxu0 %v67_v30  ;;  %794 = vmatprep.subr.mxu1 %v345_v47 }
  0x49   :  { %795 = vmatpush3.msra.mxu1 %v345_v47 }
  0x4b   :  { %744 = vmatmul.mubr.f32.gmra.mxu0 %v68_v31 }
  0x4c   :  { %746 = vmatprep.mubr.f32.mxu0 %v69_v32 }
  0x4f   :  { %747 = vmatmul.mubr.f32.gmra.mxu0 %v70_v33 }
  0x50   :  { %749 = vmatprep.mubr.f32.mxu0 %v71_v34 }
  0x53   :  { %750 = vmatmul.mubr.f32.gmra.mxu0 %v72_v35 }
  0x54   :  { %752 = vmatprep.mubr.f32.mxu0 %v73_v36 }
  0x57   :  { %753 = vmatmul.mubr.f32.gmra.mxu0 %v74_v37 }
  0x58   :  { %755 = vmatprep.mubr.f32.mxu0 %v75_v38 }
  0x5b   :  { %756 = vmatmul.mubr.f32.gmra.mxu0 %v76_v39 }
  0x5c   :  { %758 = vmatprep.mubr.f32.mxu0 %v77_v40 }
  0x5f   :  { %759 = vmatmul.mubr.f32.gmra.mxu0 %v78_v41 }
  0x60   :  { %761 = vmatprep.mubr.f32.mxu0 %v79_v42 }
  0x63   :  { %762 = vmatmul.mubr.f32.gmra.mxu0 %v80_v43 }
 0x107   :  { %v742_v49 = vpop.f32.mrf.mxu0 }
 0x108   :  { %v176_v50 = vadd.f32 %v742_v49, %v1002_v48 }
 0x109   :  { %v170_v51 = vpop.f32.mrf.mxu0 }
 0x10a   :  { %v171_v52 = vadd.f32 %v1002_v48, %v170_v51  ;;  %v330_v56 = vmax.f32 %v176_v50, 0.0 }
 0x10b   :  { %v745_v53 = vpop.f32.mrf.mxu0 }
 0x10c   :  { %v600_v54 = vpack.c.bf16 %v176_v50, %v171_v52  ;;  %v329_v55 = vmax.f32 %v171_v52, 0.0  ;;  %v186_v57 = vadd.f32 %v745_v53, %v1002_v48 }
 0x10d   :  { %v180_v58 = vpop.f32.mrf.mxu0 }
 0x10e   :  { %601 = vst [vmem:[#allocation8] sm:$0xff] %v600_v54   ;;  %v181_v59 = vadd.f32 %v1002_v48, %v180_v58  ;;  %796 = vmatprep.mubr.f32.mxu1 %v329_v55  ;;  %v332_v63 = vmax.f32 %v186_v57, 0.0 }
 0x10f   :  { %v748_v60 = vpop.f32.mrf.mxu0  ;;  %797 = vmatmul.mubr.f32.vlgmr.msra.gmra.mxu1 %v330_v56 }
 0x110   :  { %v605_v61 = vpack.c.bf16 %v186_v57, %v181_v59  ;;  %v331_v62 = vmax.f32 %v181_v59, 0.0  ;;  %v196_v0 = vadd.f32 %v748_v60, %v1002_v48 }
 0x111   :  { %v190_v1 = vpop.f32.mrf.mxu0 }
 0x112   :  { %637 = vst [vmem:[#allocation8 + $0x8] sm:$0xff] %v605_v61   ;;  %v191_v2 = vadd.f32 %v1002_v48, %v190_v1  ;;  %799 = vmatprep.mubr.f32.mxu1 %v331_v62  ;;  %v334_v6 = vmax.f32 %v196_v0, 0.0 }
 0x113   :  { %v751_v3 = vpop.f32.mrf.mxu0  ;;  %800 = vmatmul.mubr.f32.gmra.mxu1 %v332_v63 }
 0x114   :  { %v610_v4 = vpack.c.bf16 %v196_v0, %v191_v2  ;;  %v333_v5 = vmax.f32 %v191_v2, 0.0  ;;  %v206_v7 = vadd.f32 %v751_v3, %v1002_v48 }
 0x115   :  { %v200_v8 = vpop.f32.mrf.mxu0 }
 0x116   :  { %638 = vst [vmem:[#allocation8 + $0x10] sm:$0xff] %v610_v4   ;;  %v201_v9 = vadd.f32 %v1002_v48, %v200_v8  ;;  %802 = vmatprep.mubr.f32.mxu1 %v333_v5  ;;  %v336_v13 = vmax.f32 %v206_v7, 0.0 }
 0x117   :  { %v754_v10 = vpop.f32.mrf.mxu0  ;;  %803 = vmatmul.mubr.f32.gmra.mxu1 %v334_v6 }
 0x118   :  { %v615_v11 = vpack.c.bf16 %v206_v7, %v201_v9  ;;  %v335_v12 = vmax.f32 %v201_v9, 0.0  ;;  %v216_v14 = vadd.f32 %v754_v10, %v1002_v48 }
 0x119   :  { %v210_v15 = vpop.f32.mrf.mxu0 }
 0x11a   :  { %639 = vst [vmem:[#allocation8 + $0x18] sm:$0xff] %v615_v11   ;;  %v211_v16 = vadd.f32 %v1002_v48, %v210_v15  ;;  %805 = vmatprep.mubr.f32.mxu1 %v335_v12  ;;  %v338_v20 = vmax.f32 %v216_v14, 0.0 }
 0x11b   :  { %v757_v17 = vpop.f32.mrf.mxu0  ;;  %806 = vmatmul.mubr.f32.gmra.mxu1 %v336_v13 }
 0x11c   :  { %v620_v18 = vpack.c.bf16 %v216_v14, %v211_v16  ;;  %v337_v19 = vmax.f32 %v211_v16, 0.0  ;;  %v226_v21 = vadd.f32 %v757_v17, %v1002_v48 }
 0x11d   :  { %v220_v22 = vpop.f32.mrf.mxu0 }
 0x11e   :  { %640 = vst [vmem:[#allocation8 + $0x20] sm:$0xff] %v620_v18   ;;  %v221_v23 = vadd.f32 %v1002_v48, %v220_v22  ;;  %808 = vmatprep.mubr.f32.mxu1 %v337_v19  ;;  %v340_v27 = vmax.f32 %v226_v21, 0.0 }
 0x11f   :  { %v760_v24 = vpop.f32.mrf.mxu0  ;;  %809 = vmatmul.mubr.f32.gmra.mxu1 %v338_v20 }
 0x120   :  { %v625_v25 = vpack.c.bf16 %v226_v21, %v221_v23  ;;  %v339_v26 = vmax.f32 %v221_v23, 0.0  ;;  %v236_v28 = vadd.f32 %v760_v24, %v1002_v48 }
 0x121   :  { %v230_v29 = vpop.f32.mrf.mxu0 }
 0x122   :  { %641 = vst [vmem:[#allocation8 + $0x28] sm:$0xff] %v625_v25   ;;  %v231_v30 = vadd.f32 %v1002_v48, %v230_v29  ;;  %811 = vmatprep.mubr.f32.mxu1 %v339_v26  ;;  %v342_v34 = vmax.f32 %v236_v28, 0.0 }
 0x123   :  { %v763_v31 = vpop.f32.mrf.mxu0  ;;  %812 = vmatmul.mubr.f32.gmra.mxu1 %v340_v27 }
 0x124   :  { %v630_v32 = vpack.c.bf16 %v236_v28, %v231_v30  ;;  %v341_v33 = vmax.f32 %v231_v30, 0.0  ;;  %v246_v35 = vadd.f32 %v763_v31, %v1002_v48 }
 0x125   :  { %v240_v36 = vpop.f32.mrf.mxu0 }
 0x126   :  { %642 = vst [vmem:[#allocation8 + $0x30] sm:$0xff] %v630_v32   ;;  %v241_v37 = vadd.f32 %v1002_v48, %v240_v36  ;;  %814 = vmatprep.mubr.f32.mxu1 %v341_v33  ;;  %v344_v40 = vmax.f32 %v246_v35, 0.0 }
 0x127   :  { %815 = vmatmul.mubr.f32.gmra.mxu1 %v342_v34 }
 0x128   :  { %v635_v38 = vpack.c.bf16 %v246_v35, %v241_v37  ;;  %v343_v39 = vmax.f32 %v241_v37, 0.0 }
 0x12a   :  { %643 = vst [vmem:[#allocation8 + $0x38] sm:$0xff] %v635_v38   ;;  %817 = vmatprep.mubr.f32.mxu1 %v343_v39 }
 0x12b   :  { %818 = vmatmul.mubr.f32.gmra.mxu1 %v344_v40 }
 0x12c   :  { %900 = shalt.err (!%p897_p5)
}
 0x12d   :  { %s943_s15 = smov 64   ;;  %s944_s16 = smov 4   ;;  %v580_v41 = vld [vmem:[%s1036_s4] ss:$0 sm:$0xff] }
 0x12e   :  { %540 = dma.vmem_to_hbm [thread:$0]  %s535_s13, 1024, %s1037_s5, [#allocation4], %s943_s15, %s943_s15, %s944_s16  }
 0x12f   :  { %s945_s4 = smov [#allocation9]  }
 0x130   :  { %s546_s5 = sshll.u32 %s945_s4, 4  ;;  %s547_s5 = int_to_ptr.vmem [resolvable:$true] %s546_s5 }
 0x131   :  { %s909_s21 = scalar_lea.vmem %s547_s5, 2048  ;;  %p914_p7 = scmp.lt.s32.totalorder %s547_s5, %s547_s5 }
 0x132   :  { %p910_p6 = scmp.ne.s32.totalorder %s547_s5, %s909_s21  ;;  %p915_p8 = scmp.lt.s32.totalorder %s909_s21, %s909_s21 }
 0x134   :  { %p916_p9 = por %p915_p8, %p914_p7 }
 0x136   :  { %p917_p10 = pnand %p916_p9, %p910_p6 }
 0x1cf   :  { %v798_v42 = vpop.f32.mrf.mxu1 }
 0x1d0   :  { %v440_v43 = vadd.f32 %v798_v42, %v580_v41 }
 0x1d1   :  { %v434_v44 = vpop.f32.mrf.mxu1 }
 0x1d2   :  { %514 = vst [vmem:[#allocation9 + $0x8] sm:$0xff] %v440_v43  ;;  %v435_v45 = vadd.f32 %v580_v41, %v434_v44 }
 0x1d3   :  { %v801_v46 = vpop.f32.mrf.mxu1 }
 0x1d4   :  { %513 = vst [vmem:[#allocation9] sm:$0xff] %v435_v45  ;;  %v450_v47 = vadd.f32 %v801_v46, %v580_v41 }
 0x1d5   :  { %v444_v48 = vpop.f32.mrf.mxu1 }
 0x1d6   :  { %516 = vst [vmem:[#allocation9 + $0x18] sm:$0xff] %v450_v47  ;;  %v445_v49 = vadd.f32 %v580_v41, %v444_v48 }
 0x1d7   :  { %v804_v50 = vpop.f32.mrf.mxu1 }
 0x1d8   :  { %515 = vst [vmem:[#allocation9 + $0x10] sm:$0xff] %v445_v49  ;;  %v460_v51 = vadd.f32 %v804_v50, %v580_v41 }
 0x1d9   :  { %v454_v52 = vpop.f32.mrf.mxu1 }
 0x1da   :  { %518 = vst [vmem:[#allocation9 + $0x28] sm:$0xff] %v460_v51  ;;  %v455_v53 = vadd.f32 %v580_v41, %v454_v52 }
 0x1db   :  { %v807_v54 = vpop.f32.mrf.mxu1 }
 0x1dc   :  { %517 = vst [vmem:[#allocation9 + $0x20] sm:$0xff] %v455_v53  ;;  %v470_v55 = vadd.f32 %v807_v54, %v580_v41 }
 0x1dd   :  { %v464_v56 = vpop.f32.mrf.mxu1 }
 0x1de   :  { %520 = vst [vmem:[#allocation9 + $0x38] sm:$0xff] %v470_v55  ;;  %v465_v57 = vadd.f32 %v580_v41, %v464_v56 }
 0x1df   :  { %v810_v58 = vpop.f32.mrf.mxu1 }
 0x1e0   :  { %519 = vst [vmem:[#allocation9 + $0x30] sm:$0xff] %v465_v57  ;;  %v480_v59 = vadd.f32 %v810_v58, %v580_v41 }
 0x1e1   :  { %v474_v60 = vpop.f32.mrf.mxu1 }
 0x1e2   :  { %522 = vst [vmem:[#allocation9 + $0x48] sm:$0xff] %v480_v59  ;;  %v475_v61 = vadd.f32 %v580_v41, %v474_v60 }
 0x1e3   :  { %v813_v62 = vpop.f32.mrf.mxu1 }
 0x1e4   :  { %521 = vst [vmem:[#allocation9 + $0x40] sm:$0xff] %v475_v61  ;;  %v490_v63 = vadd.f32 %v813_v62, %v580_v41 }
 0x1e5   :  { %v484_v0 = vpop.f32.mrf.mxu1 }
 0x1e6   :  { %524 = vst [vmem:[#allocation9 + $0x58] sm:$0xff] %v490_v63  ;;  %v485_v1 = vadd.f32 %v580_v41, %v484_v0 }
 0x1e7   :  { %v816_v2 = vpop.f32.mrf.mxu1 }
 0x1e8   :  { %523 = vst [vmem:[#allocation9 + $0x50] sm:$0xff] %v485_v1  ;;  %v500_v3 = vadd.f32 %v816_v2, %v580_v41 }
 0x1e9   :  { %v494_v4 = vpop.f32.mrf.mxu1 }
 0x1ea   :  { %526 = vst [vmem:[#allocation9 + $0x68] sm:$0xff] %v500_v3  ;;  %v495_v5 = vadd.f32 %v580_v41, %v494_v4 }
 0x1eb   :  { %v819_v6 = vpop.f32.mrf.mxu1 }
 0x1ec   :  { %525 = vst [vmem:[#allocation9 + $0x60] sm:$0xff] %v495_v5  ;;  %v510_v7 = vadd.f32 %v819_v6, %v580_v41 }
 0x1ed   :  { %v504_v8 = vpop.f32.mrf.mxu1 }
 0x1ee   :  { %528 = vst [vmem:[#allocation9 + $0x78] sm:$0xff] %v510_v7  ;;  %v505_v9 = vadd.f32 %v580_v41, %v504_v8 }
 0x1f0   :  { %527 = vst [vmem:[#allocation9 + $0x70] sm:$0xff] %v505_v9 }
 0x1f1   :  { %920 = shalt.err (!%p917_p10)
}
 0x1f2   :  { %552 = dma.vmem_to_hbm [thread:$0]  %s547_s5, 2048, %s1038_s6, [#allocation10], %s939_s26, %s939_s26, %s940_s27  }
 0x1f3   :  { %933 = dma.done.wait [#allocation4], 1024  }
 0x1f4   :  { %934 = vsyncadd [#allocation4], 4294966272 }
 0x1f5   :  { %935 = dma.done.wait [#allocation10], 2048  }
 0x1f6   :  { %936 = vsyncadd [#allocation10], 4294965248 }
 0x1f7   :  { %559 = vsyncpa [#allocation3], 1 }
 0x1f8   :  { %560 = vsyncpa [#allocation6], 1 }
 0x1f9   :  { %561 = vsyncpa [#allocation4], 1 }
 0x1fa   :  { %562 = vsyncpa [#allocation10], 1 }

</bundles_post_ra>
